<compile_context>
chip_gen: v7x
topology: tpu7x:2x2x1
jax: 0.10.0
libtpu: 0.0.40
codegen_flags: <defaults>
</compile_context>

<pallas_src>
import functools

import jax
import jax.numpy as jnp
from jax.experimental import pallas as pl
from jax.experimental.pallas import tpu as pltpu

EPS = 1e-5
F_REAL = 100     # real feature width of car_rot_linear output / x_mlp
F_PAD = 128      # lane-dense padded feature width
OUT_REAL = 3     # trans_pred output width
OUT_PAD = 128    # lane-dense padded output width
# Batch tile: at R=32 a tile is ~2.3 MiB (x_mlp + x_rot + out), x2 for double
# buffering ~4.6 MiB -> comfortably inside the 32 MiB scoped VMEM default on
# v7x; v5e/v6e (128 MiB VMEM) could raise this 2-4x.
TILE_B_MAX = 2048


def _round_up(x, m):
    return (x + m - 1) // m * m


# ---------------------------------------------------------------------------
# Pass 1: accumulate BN batch statistics of h = x_rot @ W1 + b1 over all tiles.
# ---------------------------------------------------------------------------
def _stats_kernel(x_rot_ref, w1_ref, b1_ref, sum_ref, sq_ref, *, batch, tile_b):
    i = pl.program_id(0)

    @pl.when(i == 0)
    def _():
        sum_ref[...] = jnp.zeros_like(sum_ref)
        sq_ref[...] = jnp.zeros_like(sq_ref)

    x = x_rot_ref[...].astype(jnp.float32)
    h = jnp.dot(x, w1_ref[...], preferred_element_type=jnp.float32) + b1_ref[...]

    # Mask batch-padding rows so they do not pollute the batch statistics.
    row = i * tile_b + jax.lax.broadcasted_iota(jnp.int32, (tile_b, 1), 0)
    h = jnp.where(row < batch, h, 0.0)

    sum_ref[...] += jnp.sum(h, axis=0, keepdims=True)
    sq_ref[...] += jnp.sum(h * h, axis=0, keepdims=True)


# ---------------------------------------------------------------------------
# Pass 2: BN (from pass-1 stats) + relu + concat-matmul, per independent tile.
# ---------------------------------------------------------------------------
def _fwd_kernel(x_mlp_ref, x_rot_ref, w1_ref, b1_ref, gamma_ref, beta_ref,
                w2a_ref, w2b_ref, b2_ref, sum_ref, sq_ref, out_ref, *, batch):
    inv_b = jnp.float32(1.0 / batch)
    mean = sum_ref[...] * inv_b                                 # (1, F_PAD)
    var = jnp.maximum(sq_ref[...] * inv_b - mean * mean, 0.0)   # biased variance
    scale = gamma_ref[...] * jax.lax.rsqrt(var + EPS)
    shift = beta_ref[...] - mean * scale

    x_rot = x_rot_ref[...].astype(jnp.float32)
    h = jnp.dot(x_rot, w1_ref[...], preferred_element_type=jnp.float32) + b1_ref[...]
    h = jnp.maximum(h * scale + shift, 0.0)                     # BN + relu
    # relu(concat(a, b)) == concat(relu(a), relu(b))
    x_mlp = jnp.maximum(x_mlp_ref[...].astype(jnp.float32), 0.0)

    out = (jnp.dot(x_mlp, w2a_ref[...], preferred_element_type=jnp.float32)
           + jnp.dot(h, w2b_ref[...], preferred_element_type=jnp.float32)
           + b2_ref[...])
    out_ref[...] = out.astype(out_ref.dtype)


# ---------------------------------------------------------------------------
# Wrapper
# ---------------------------------------------------------------------------
def mlpconcat_predictor(x_mlp, x_car_rot, params, *, tile_b_max=TILE_B_MAX):
    if x_mlp.ndim == 4:
        assert x_mlp.shape[2] == 1 and x_mlp.shape[3] == 1, x_mlp.shape
    B = x_mlp.shape[0]
    x_mlp = x_mlp.reshape(B, -1)          # metadata-only (trailing dims are 1)
    x_car_rot = x_car_rot.reshape(B, -1)
    feat = x_mlp.shape[1]
    R = x_car_rot.shape[1]
    assert feat == F_REAL, feat

    tile_b = min(tile_b_max, _round_up(B, 8))
    b_pad = _round_up(B, tile_b)
    nt = b_pad // tile_b

    # Lane-dense, batch-padded activations (weights are already padded).
    x_mlp_p = jnp.pad(x_mlp.astype(jnp.float32),
                      ((0, b_pad - B), (0, F_PAD - feat)))
    x_rot_p = jnp.pad(x_car_rot.astype(jnp.float32), ((0, b_pad - B), (0, 0)))

    w1, b1, gamma, beta, w2a, w2b, b2 = (
        params["w1"], params["b1"], params["gamma"], params["beta"],
        params["w2a"], params["w2b"], params["b2"])

    full = lambda shape: pl.BlockSpec(shape, lambda i: (0, 0))
    tiled = lambda last: pl.BlockSpec((tile_b, last), lambda i: (i, 0))

    # ---- pass 1: batch statistics ----------------------------------------
    cost1 = pl.CostEstimate(
        flops=2 * b_pad * R * F_PAD + 4 * b_pad * F_PAD,
        transcendentals=0,
        bytes_accessed=4 * (b_pad * R + R * F_PAD + 3 * F_PAD))
    h_sum, h_sq = pl.pallas_call(
        functools.partial(_stats_kernel, batch=B, tile_b=tile_b),
        grid=(nt,),
        in_specs=[tiled(R), full((R, F_PAD)), full((1, F_PAD))],
        out_specs=(full((1, F_PAD)), full((1, F_PAD))),
        out_shape=(jax.ShapeDtypeStruct((1, F_PAD), jnp.float32),
                   jax.ShapeDtypeStruct((1, F_PAD), jnp.float32)),
        compiler_params=pltpu.CompilerParams(dimension_semantics=("arbitrary",)),
        cost_estimate=cost1,
    )(x_rot_p, w1, b1)

    # ---- pass 2: normalize + relu + concat matmul -------------------------
    cost2 = pl.CostEstimate(
        flops=2 * b_pad * F_PAD * (R + 2 * F_PAD) + 8 * b_pad * F_PAD,
        transcendentals=nt * F_PAD,
        bytes_accessed=4 * (3 * b_pad * F_PAD + b_pad * R + R * F_PAD
                            + 2 * F_PAD * OUT_PAD + 7 * F_PAD))
    out = pl.pallas_call(
        functools.partial(_fwd_kernel, batch=B),
        grid=(nt,),
        in_specs=[tiled(F_PAD), tiled(R),
                  full((R, F_PAD)), full((1, F_PAD)), full((1, F_PAD)),
                  full((1, F_PAD)), full((F_PAD, OUT_PAD)),
                  full((F_PAD, OUT_PAD)), full((1, OUT_PAD)),
                  full((1, F_PAD)), full((1, F_PAD))],
        out_specs=tiled(OUT_PAD),
        out_shape=jax.ShapeDtypeStruct((b_pad, OUT_PAD), jnp.float32),
        compiler_params=pltpu.CompilerParams(dimension_semantics=("parallel",)),
        cost_estimate=cost2,
    )(x_mlp_p, x_rot_p, w1, b1, gamma, beta, w2a, w2b, b2, h_sum, h_sq)

    return out[:B, :OUT_REAL]


def init_params(representation_size, key):
    """PyTorch init, stored in the lane-dense padded layout used by the kernels."""
    k1, k2 = jax.random.split(key)
    # car_rot_linear.weight ~ N(0, 0.01), torch shape (100, R); stored transposed
    # (R, 128) with zero-padded columns. bias = 0.
    w1_raw = 0.01 * jax.random.normal(k1, (F_REAL, representation_size), jnp.float32)
    w1 = jnp.zeros((representation_size, F_PAD), jnp.float32).at[:, :F_REAL].set(w1_raw.T)
    b1 = jnp.zeros((1, F_PAD), jnp.float32)
    # BatchNorm1d(100): weight=1, bias=0 (padded columns: gamma=1/beta=0 -> output 0).
    gamma = jnp.ones((1, F_PAD), jnp.float32)
    beta = jnp.zeros((1, F_PAD), jnp.float32)
    # trans_pred.weight ~ N(0, 0.1), torch shape (3, 200); stored transposed,
    # split at the concat boundary and zero-padded to (128, 128) each. bias = 0.
    w2_raw = 0.1 * jax.random.normal(k2, (OUT_REAL, 2 * F_REAL), jnp.float32)
    w2 = w2_raw.T                                             # (200, 3)
    w2a = jnp.zeros((F_PAD, OUT_PAD), jnp.float32).at[:F_REAL, :OUT_REAL].set(w2[:F_REAL, :])
    w2b = jnp.zeros((F_PAD, OUT_PAD), jnp.float32).at[:F_REAL, :OUT_REAL].set(w2[F_REAL:, :])
    b2 = jnp.zeros((1, OUT_PAD), jnp.float32)
    return {"w1": w1, "b1": b1, "gamma": gamma, "beta": beta,
            "w2a": w2a, "w2b": w2b, "b2": b2}


if __name__ == "__main__":
    key = jax.random.PRNGKey(0)
    k_p, k_mlp, k_rot = jax.random.split(key, 3)

    B = 8
    REPR = 32
    params = init_params(REPR, k_p)

    # x_mlp arrives 4D (B, 100, 1, 1) like a global-pooled conv feature map.
    x_mlp = jax.random.normal(k_mlp, (B, F_REAL, 1, 1), jnp.float32)
    x_car_rot = jax.random.normal(k_rot, (B, REPR), jnp.float32)

    out = mlpconcat_predictor(x_mlp, x_car_rot, params)
    jax.block_until_ready(out)
    assert out.shape == (B, OUT_REAL), out.shape

    # Plain-JAX reference (training-mode BatchNorm1d) on the unpadded weights.
    xm = x_mlp.reshape(B, -1)
    xr = x_car_rot.reshape(B, -1)
    h = xr @ params["w1"][:, :F_REAL] + params["b1"][0, :F_REAL]
    mean = h.mean(axis=0)
    var = ((h - mean) ** 2).mean(axis=0)
    h_bn = ((h - mean) / jnp.sqrt(var + EPS)
            * params["gamma"][0, :F_REAL] + params["beta"][0, :F_REAL])
    merged = jnp.maximum(jnp.concatenate([xm, jnp.maximum(h_bn, 0.0)], axis=1), 0.0)
    w2_full = jnp.concatenate([params["w2a"][:F_REAL, :OUT_REAL],
                               params["w2b"][:F_REAL, :OUT_REAL]], axis=0)
    ref = merged @ w2_full + params["b2"][0, :OUT_REAL]
    assert jnp.allclose(out, ref, atol=1e-3, rtol=1e-3), \
        float(jnp.max(jnp.abs(out - ref)))

    print("KERNEL_OK")
</pallas_src>

<mosaic_0001>
module attributes {stable_mosaic.version = 11 : i64} {
  func.func @_stats_kernel(%arg0: i32, %arg1: memref<8x32xf32, #tpu.memory_space<vmem>>, %arg2: memref<32x128xf32, #tpu.memory_space<vmem>>, %arg3: memref<1x128xf32, #tpu.memory_space<vmem>>, %arg4: memref<1x128xf32, #tpu.memory_space<vmem>>, %arg5: memref<1x128xf32, #tpu.memory_space<vmem>>) attributes {dimension_semantics = [#tpu.dimension_semantics<arbitrary>], iteration_bounds = array<i64: 1>, scalar_prefetch = 0 : i64, scratch_operands = 0 : i64, tpu.core_type = #tpu.core_type<tc>, window_params = [{transform_indices = @transform_0, window_bounds = array<i64: 8, 32>}, {pipeline_mode = #tpu.pipeline_mode<synchronous>, transform_indices = @transform_1, window_bounds = array<i64: 32, 128>}, {pipeline_mode = #tpu.pipeline_mode<synchronous>, transform_indices = @transform_2, window_bounds = array<i64: 1, 128>}, {pipeline_mode = #tpu.pipeline_mode<synchronous>, transform_indices = @transform_3, window_bounds = array<i64: 1, 128>}, {pipeline_mode = #tpu.pipeline_mode<synchronous>, transform_indices = @transform_4, window_bounds = array<i64: 1, 128>}]} {
    %c0_i32 = arith.constant 0 : i32
    %0 = arith.cmpi eq, %arg0, %c0_i32 : i32
    %1 = arith.extui %0 : i1 to i32
    %c0_i32_0 = arith.constant 0 : i32
    %2 = arith.cmpi ne, %1, %c0_i32_0 : i32
    scf.if %2 {
      %cst_18 = arith.constant 0.000000e+00 : f32
      %30 = vector.broadcast %cst_18 : f32 to vector<1x128xf32>
      %c0_19 = arith.constant 0 : index
      %c0_20 = arith.constant 0 : index
      %31 = vector.load %arg4[%c0_19, %c0_20] : memref<1x128xf32, #tpu.memory_space<vmem>>, vector<1x128xf32>
      tpu.vector_store %arg4[%c0_19, %c0_20], %30 {strides = array<i32>} : memref<1x128xf32, #tpu.memory_space<vmem>>, vector<1x128xf32>,
      %cst_21 = arith.constant 0.000000e+00 : f32
      %32 = vector.broadcast %cst_21 : f32 to vector<1x128xf32>
      %c0_22 = arith.constant 0 : index
      %c0_23 = arith.constant 0 : index
      %33 = vector.load %arg5[%c0_22, %c0_23] : memref<1x128xf32, #tpu.memory_space<vmem>>, vector<1x128xf32>
      tpu.vector_store %arg5[%c0_22, %c0_23], %32 {strides = array<i32>} : memref<1x128xf32, #tpu.memory_space<vmem>>, vector<1x128xf32>,
    } else {
    }
    %c0 = arith.constant 0 : index
    %c0_1 = arith.constant 0 : index
    %3 = vector.load %arg1[%c0, %c0_1] : memref<8x32xf32, #tpu.memory_space<vmem>>, vector<8x32xf32>
    %c0_2 = arith.constant 0 : index
    %c0_3 = arith.constant 0 : index
    %4 = vector.load %arg2[%c0_2, %c0_3] : memref<32x128xf32, #tpu.memory_space<vmem>>, vector<32x128xf32>
    %cst = arith.constant dense<0.000000e+00> : vector<8x128xf32>
    %5 = tpu.matmul %3, %4, %cst {dimension_numbers = #tpu.dot_dimension_numbers<[1], [0], [0], [1], [0, 0, 1, 1], [], []>} : vector<8x32xf32>, vector<32x128xf32>, vector<8x128xf32> -> vector<8x128xf32>
    %c0_4 = arith.constant 0 : index
    %c0_5 = arith.constant 0 : index
    %6 = vector.load %arg3[%c0_4, %c0_5] : memref<1x128xf32, #tpu.memory_space<vmem>>, vector<1x128xf32>
    %7 = vector.broadcast %6 : vector<1x128xf32> to vector<8x128xf32>
    %8 = arith.addf %5, %7 : vector<8x128xf32>
    %c8_i32 = arith.constant 8 : i32
    %9 = arith.muli %arg0, %c8_i32 : i32
    %10 = tpu.iota {dimensions = array<i32: 0>} : vector<8x1xi32>
    %11 = vector.broadcast %9 : i32 to vector<8x1xi32>
    %12 = arith.addi %11, %10 : vector<8x1xi32>
    %c8_i32_6 = arith.constant 8 : i32
    %13 = vector.broadcast %c8_i32_6 : i32 to vector<8x1xi32>
    %14 = arith.cmpi slt, %12, %13 : vector<8x1xi32>
    %cst_7 = arith.constant 0.000000e+00 : f32
    %15 = vector.shape_cast %14 : vector<8x1xi1> to vector<8x1xi1>
    %16 = vector.broadcast %15 : vector<8x1xi1> to vector<8x128xi1>
    %17 = vector.broadcast %cst_7 : f32 to vector<8x128xf32>
    %18 = arith.select %16, %8, %17 : vector<8x128xi1>, vector<8x128xf32>
    %c0_8 = arith.constant 0 : index
    %c0_9 = arith.constant 0 : index
    %19 = vector.load %arg4[%c0_8, %c0_9] : memref<1x128xf32, #tpu.memory_space<vmem>>, vector<1x128xf32>
    %cst_10 = arith.constant dense<0.000000e+00> : vector<128xf32>
    %20 = vector.multi_reduction <add>, %18, %cst_10 [0] : vector<8x128xf32> to vector<128xf32>
    %21 = vector.shape_cast %20 : vector<128xf32> to vector<1x128xf32>
    %22 = arith.addf %19, %21 : vector<1x128xf32>
    %c0_11 = arith.constant 0 : index
    %c0_12 = arith.constant 0 : index
    %23 = vector.load %arg4[%c0_11, %c0_12] : memref<1x128xf32, #tpu.memory_space<vmem>>, vector<1x128xf32>
    tpu.vector_store %arg4[%c0_11, %c0_12], %22 {strides = array<i32>} : memref<1x128xf32, #tpu.memory_space<vmem>>, vector<1x128xf32>,
    %c0_13 = arith.constant 0 : index
    %c0_14 = arith.constant 0 : index
    %24 = vector.load %arg5[%c0_13, %c0_14] : memref<1x128xf32, #tpu.memory_space<vmem>>, vector<1x128xf32>
    %25 = arith.mulf %18, %18 : vector<8x128xf32>
    %cst_15 = arith.constant dense<0.000000e+00> : vector<128xf32>
    %26 = vector.multi_reduction <add>, %25, %cst_15 [0] : vector<8x128xf32> to vector<128xf32>
    %27 = vector.shape_cast %26 : vector<128xf32> to vector<1x128xf32>
    %28 = arith.addf %24, %27 : vector<1x128xf32>
    %c0_16 = arith.constant 0 : index
    %c0_17 = arith.constant 0 : index
    %29 = vector.load %arg5[%c0_16, %c0_17] : memref<1x128xf32, #tpu.memory_space<vmem>>, vector<1x128xf32>
    tpu.vector_store %arg5[%c0_16, %c0_17], %28 {strides = array<i32>} : memref<1x128xf32, #tpu.memory_space<vmem>>, vector<1x128xf32>,
    return
  }
  func.func @transform_0(%arg0: i32) -> (i32, i32) {
    %c0_i32 = arith.constant 0 : i32
    %c0_i32_0 = arith.constant 0 : i32
    return %arg0, %c0_i32 : i32, i32
  }
  func.func @transform_1(%arg0: i32) -> (i32, i32) {
    %c0_i32 = arith.constant 0 : i32
    %c0_i32_0 = arith.constant 0 : i32
    %c0_i32_1 = arith.constant 0 : i32
    return %c0_i32, %c0_i32_0 : i32, i32
  }
  func.func @transform_2(%arg0: i32) -> (i32, i32) {
    %c0_i32 = arith.constant 0 : i32
    %c0_i32_0 = arith.constant 0 : i32
    %c0_i32_1 = arith.constant 0 : i32
    return %c0_i32, %c0_i32_0 : i32, i32
  }
  func.func @transform_3(%arg0: i32) -> (i32, i32) {
    %c0_i32 = arith.constant 0 : i32
    %c0_i32_0 = arith.constant 0 : i32
    %c0_i32_1 = arith.constant 0 : i32
    return %c0_i32, %c0_i32_0 : i32, i32
  }
  func.func @transform_4(%arg0: i32) -> (i32, i32) {
    %c0_i32 = arith.constant 0 : i32
    %c0_i32_0 = arith.constant 0 : i32
    %c0_i32_1 = arith.constant 0 : i32
    return %c0_i32, %c0_i32_0 : i32, i32
  }
}

</mosaic_0001>

<bundles_post_ra>
// kernel: tpu_custom_call.1
= control target key start
LH: loop header
LB: loop body
LE: loop exit
PB: predicated region body
PF: predicated region fallthrough
CT: control target
= control target key end

     0   :  { %10 = vsyncpa [#allocation3], 0  ;;  %s423_s0 = inlined_call_operand.hbm [shape: f32[8,32], index: 0, kind: input, shape index: {}]   ;;  %s424_s1 = inlined_call_operand.hbm [shape: f32[32,128], index: 1, kind: input, shape index: {}]   ;;  %s425_s2 = inlined_call_operand.vmem [shape: f32[1,128], index: 2, kind: input, shape index: {}]   ;;  %s426_s3 = inlined_call_operand.hbm [shape: f32[1,128], index: 3, kind: output, shape index: {0}]   ;;  %s427_s4 = inlined_call_operand.hbm [shape: f32[1,128], index: 4, kind: output, shape index: {1}]  }
   0x1   :  { %11 = vsyncpa [#allocation6], 0 }
   0x2   :  { %12 = vsyncpa [#allocation4], 0 }
   0x3   :  { %13 = vsyncpa [#allocation9], 0  ;;  %s323_s15 = smov [#allocation2]   ;;  %s324_s17 = smov [#allocation5]  }
   0x4   :  { %s20_s16 = sshll.u32 %s323_s15, 4  ;;  %s29_s18 = sshll.u32 %s324_s17, 4  ;;  %s21_s16 = int_to_ptr.vmem [resolvable:$true] %s20_s16  ;;  %s357_s18 = int_to_ptr.vmem [resolvable:$true] %s29_s18 }
   0x5   :  { %s227_s21 = scalar_lea.hbm %s423_s0, 128 }
   0x6   :  { %p228_p0 = scmp.ne.s32.totalorder %s423_s0, %s227_s21  ;;  %p231_p1 = scmp.lt.u32.totalorder %s227_s21, %s423_s0 }
   0x8   :  { %p233_p2 = pnand %p231_p1, %p228_p0 }
   0xa   :  { %236 = shalt.err (!%p233_p2)
}
   0xb   :  { %s237_s26 = scalar_lea.vmem %s21_s16, 128  ;;  %p242_p4 = scmp.lt.s32.totalorder %s21_s16, %s21_s16 }
   0xc   :  { %p238_p3 = scmp.ne.s32.totalorder %s21_s16, %s237_s26  ;;  %p243_p5 = scmp.lt.s32.totalorder %s237_s26, %s237_s26 }
   0xe   :  { %p244_p6 = por %p243_p5, %p242_p4 }
  0x10   :  { %p245_p7 = pnand %p244_p6, %p238_p3 }
  0x12   :  { %248 = shalt.err (!%p245_p7)
}
  0x13   :  { %23 = dma.hbm_to_vmem [thread:$0]  %s423_s0, 128, %s21_s16, [#allocation3]  }
  0x14   :  { %s249_s5 = scalar_lea.hbm %s424_s1, 512 }
  0x15   :  { %p250_p8 = scmp.ne.s32.totalorder %s424_s1, %s249_s5  ;;  %p253_p9 = scmp.lt.u32.totalorder %s249_s5, %s424_s1 }
  0x17   :  { %p255_p10 = pnand %p253_p9, %p250_p8 }
  0x19   :  { %258 = shalt.err (!%p255_p10)
}
  0x1a   :  { %s259_s10 = scalar_lea.vmem %s357_s18, 512  ;;  %p264_p12 = scmp.lt.s32.totalorder %s357_s18, %s357_s18 }
  0x1b   :  { %p260_p11 = scmp.ne.s32.totalorder %s357_s18, %s259_s10  ;;  %p265_p13 = scmp.lt.s32.totalorder %s259_s10, %s259_s10 }
  0x1d   :  { %p266_p0 = por %p265_p13, %p264_p12 }
  0x1f   :  { %p267_p1 = pnand %p266_p0, %p260_p11 }
  0x21   :  { %270 = shalt.err (!%p267_p1)
}
  0x22   :  { %s325_s0 = smov 128   ;;  %s326_s11 = smov 8  }
  0x23   :  { %35 = dma.hbm_to_vmem [thread:$0]  %s424_s1, 512, %s357_s18, [#allocation6], %s325_s0, %s325_s0, %s326_s11  }
  0x24   :  { %315 = dma.done.wait [#allocation3], 128  }
  0x25   :  { %316 = vsyncadd [#allocation3], 4294967168 }
  0x26   :  { %317 = dma.done.wait [#allocation6], 512  }
  0x27   :  { %318 = vsyncadd [#allocation6], 4294966784  ;;  %v327_v0 = vmov 0.0|0.0   ;;  %v328_v1 = vmov 0.0   ;;  %vm329_vm0 = vmmov 0   ;;  %v51_v2 = vld [vmem:[#allocation5] sm:$0xff] }
  0x28   :  { %212 = vmatprep.subr.bf16.mxu0 %v327_v0  ;;  %48 = vst [vmem:[#allocation7] sm:$0x1] %v328_v1  ;;  %49 = vst [vmem:[#allocation8] sm:$0x1] %v328_v1  ;;  %209 = vmatprep.mubr.msk.f32.mxu0 %vm329_vm0, %v328_v1  ;;  %v52_v3 = vld [vmem:[#allocation5 + $0x8] sm:$0xff]  ;;  %v53_v4 = vld [vmem:[#allocation5 + $0x10] sm:$0xff] }
  0x29   :  { %v213_v5 = vpack.c.bf16 %v52_v3, %v51_v2  ;;  %v54_v6 = vld [vmem:[#allocation5 + $0x18] sm:$0xff]  ;;  %vm62_vm1 = vcmask 261120   ;;  %s330_s15 = smov [#allocation7]  }
  0x2a   :  { %v216_v7 = vpack.c.bf16 %v54_v6, %v53_v4  ;;  %v50_v8 = vld [vmem:[#allocation2] sm:$0xff]  ;;  %s170_s16 = sshll.u32 %s330_s15, 4  ;;  %s171_s16 = int_to_ptr.vmem [resolvable:$true] %s170_s16 }
  0x2b   :  { %214 = vmatpush3.bf16.msra.mxu0 %v213_v5  ;;  %v194_v9 = vld [vmem:[%s425_s2] ss:$0 sm:$0xff]  ;;  %s331_s2 = smov [#allocation8]   ;;  %s271_s18 = scalar_lea.vmem %s171_s16, 16 }
  0x2c   :  { %215 = vmatprep.subr.bf16.mxu0 %v327_v0  ;;  %s180_s17 = sshll.u32 %s331_s2, 4  ;;  %p272_p2 = scmp.ne.s32.totalorder %s171_s16, %s271_s18  ;;  %s391_s17 = int_to_ptr.vmem [resolvable:$true] %s180_s17 }
  0x2d   :  { %s275_s19 = scalar_lea.vmem %s171_s16, 32  ;;  %p276_p3 = scmp.lt.s32.totalorder %s171_s16, %s171_s16 }
  0x2e   :  { %p277_p4 = scmp.lt.s32.totalorder %s275_s19, %s271_s18 }
  0x2f   :  { %217 = vmatpush3.bf16.msra.mxu0 %v216_v7  ;;  %v145_v23 = vld [vmem:[#allocation7] sm:$0x1]  ;;  %v154_v26 = vld [vmem:[#allocation8] sm:$0x1] }
  0x30   :  { %p278_p5 = por %p277_p4, %p276_p3 }
  0x32   :  { %210 = vmatmul.mubr.msk.f32.vlgmr.msra.gmra.mrb[0].mxu0 %vm62_vm1, %v50_v8  ;;  %p279_p6 = pnand %p278_p5, %p272_p2 }
 0x105   :  { %v132_v10 = vpop.f32.mrb[0].mxu0 }
 0x106   :  { %v133_v11 = vadd.f32 %v194_v9, %v132_v10  ;;  %v211_v12 = vpop.f32.mrb[1].mxu0 }
 0x108   :  { %v146_v13 = vrot.slane %v133_v11, 4  ;;  %v155_v14 = vmul.f32 %v133_v11, %v133_v11 }
 0x10a   :  { %v147_v15 = vadd.f32 %v146_v13, %v133_v11  ;;  %v156_v16 = vrot.slane %v155_v14, 4 }
 0x10c   :  { %v148_v17 = vrot.slane %v147_v15, 2  ;;  %v157_v18 = vadd.f32 %v156_v16, %v155_v14 }
 0x10e   :  { %v149_v19 = vadd.f32 %v148_v17, %v147_v15  ;;  %v158_v20 = vrot.slane %v157_v18, 2 }
 0x110   :  { %v150_v21 = vrot.slane %v149_v19, 1  ;;  %v159_v22 = vadd.f32 %v158_v20, %v157_v18 }
 0x112   :  { %v151_v24 = vadd.f32 %v150_v21, %v149_v19  ;;  %v160_v25 = vrot.slane %v159_v22, 1 }
 0x114   :  { %v152_v27 = vadd.f32 %v151_v24, %v145_v23  ;;  %v161_v28 = vadd.f32 %v160_v25, %v159_v22 }
 0x116   :  { %153 = vst [vmem:[#allocation7] sm:$0x1] %v152_v27  ;;  %v162_v29 = vadd.f32 %v161_v28, %v154_v26 }
 0x117   :  { %282 = shalt.err (!%p279_p6)
}
 0x118   :  { %s283_s22 = scalar_lea.hbm %s426_s3, 16 }
 0x119   :  { %p284_p7 = scmp.ne.s32.totalorder %s426_s3, %s283_s22  ;;  %p287_p8 = scmp.lt.u32.totalorder %s283_s22, %s426_s3 }
 0x11b   :  { %p289_p9 = pnand %p287_p8, %p284_p7 }
 0x11d   :  { %292 = shalt.err (!%p289_p9)
}
 0x11e   :  { %173 = dma.vmem_to_hbm [thread:$0]  %s171_s16, 16, %s426_s3, [#allocation4]   ;;  %163 = vst [vmem:[#allocation8] sm:$0x1] %v162_v29 }
 0x11f   :  { %s293_s29 = scalar_lea.vmem %s391_s17, 16  ;;  %s297_s30 = scalar_lea.vmem %s391_s17, 32 }
 0x120   :  { %p294_p10 = scmp.ne.s32.totalorder %s391_s17, %s293_s29  ;;  %p298_p11 = scmp.lt.s32.totalorder %s391_s17, %s391_s17 }
 0x121   :  { %p299_p12 = scmp.lt.s32.totalorder %s297_s30, %s293_s29 }
 0x123   :  { %p300_p13 = por %p299_p12, %p298_p11 }
 0x125   :  { %p301_p0 = pnand %p300_p13, %p294_p10 }
 0x127   :  { %304 = shalt.err (!%p301_p0)
}
 0x128   :  { %s305_s7 = scalar_lea.hbm %s427_s4, 16 }
 0x129   :  { %p306_p1 = scmp.ne.s32.totalorder %s427_s4, %s305_s7  ;;  %p309_p2 = scmp.lt.u32.totalorder %s305_s7, %s427_s4 }
 0x12b   :  { %p311_p3 = pnand %p309_p2, %p306_p1 }
 0x12d   :  { %314 = shalt.err (!%p311_p3)
}
 0x12e   :  { %183 = dma.vmem_to_hbm [thread:$0]  %s391_s17, 16, %s427_s4, [#allocation9]  }
 0x12f   :  { %319 = dma.done.wait [#allocation4], 16  }
 0x130   :  { %320 = vsyncadd [#allocation4], 4294967280 }
 0x131   :  { %321 = dma.done.wait [#allocation9], 16  }
 0x132   :  { %322 = vsyncadd [#allocation9], 4294967280 }
 0x133   :  { %190 = vsyncpa [#allocation3], 1 }
 0x134   :  { %191 = vsyncpa [#allocation6], 1 }
 0x135   :  { %192 = vsyncpa [#allocation4], 1 }
 0x136   :  { %193 = vsyncpa [#allocation9], 1 }

</bundles_post_ra>
